<compile_context>
chip_gen: v6e
topology: v6e:2x2x1
jax: 0.10.0
libtpu: 0.0.40
codegen_flags: <defaults>
</compile_context>

<pallas_src>
import jax
import jax.numpy as jnp
from jax import lax
from jax.experimental import pallas as pl
from jax.experimental.pallas import tpu as pltpu


def _exemplar_linear_kernel(x_ref, mem_ref, o_ref):
    # x_ref:   (tm, tk)  block of input
    # mem_ref: (tn, tk)  block of memory (rows = instances)
    # o_ref:   (tm, tn)  f32 output block, resident across the K grid axis.
    # Contract K against K directly — no transpose of the memory tile.
    acc = lax.dot_general(
        x_ref[...],
        mem_ref[...],
        dimension_numbers=(((1,), (1,)), ((), ())),
        preferred_element_type=jnp.float32,
    )

    @pl.when(pl.program_id(2) == 0)
    def _():
        o_ref[...] = acc

    @pl.when(pl.program_id(2) > 0)
    def _():
        o_ref[...] += acc


def _round_up(x, m):
    return ((x + m - 1) // m) * m


def _tile_config():
    """Per-generation tile sizes + scoped-VMEM limit (f32 operands)."""
    kind = ""
    try:
        kind = jax.devices()[0].device_kind.lower()
    except Exception:  # pragma: no cover - defensive, keep defaults
        pass
    if "v7" in kind:
        # 64 MiB VMEM per TensorCore -> halve the working set vs v6e.
        return dict(tm=256, tn=512, tk=512, vmem=48 * 1024 * 1024)
    if "v6" in kind:
        # 128 MiB VMEM, ~1.4 TB/s HBM: stream big (N, K) memory tiles.
        return dict(tm=256, tn=1024, tk=1024, vmem=96 * 1024 * 1024)
    if "v5" in kind:
        # 4x128x128 MXU -> 128-aligned tiles; large tk to amortize per-step cost.
        return dict(tm=128, tn=256, tk=512, vmem=64 * 1024 * 1024)
    return dict(tm=128, tn=256, tk=512, vmem=48 * 1024 * 1024)


def exemplar_linear_forward(x, memory, targets=None, momentum=0.1,
                            tm=None, tn=None, tk=None):
    """Pallas implementation of ExemplarLinearFunc.forward: x @ memory.T."""
    del targets, momentum  # TODO(synk): backward-only memory momentum update not implemented here.
    M, K = x.shape
    N, K2 = memory.shape
    assert K == K2, "feature dims must match"

    cfg = _tile_config()
    # Clamp tiles to the (alignment-rounded) problem size so small problems
    # become a single block instead of a padded multi-step grid.
    tm = tm if tm is not None else min(cfg["tm"], _round_up(M, 8))
    tn = tn if tn is not None else min(cfg["tn"], _round_up(N, 128))
    tk = tk if tk is not None else min(cfg["tk"], _round_up(K, 128))

    # Zero-pad instead of asserting divisibility (zeros are neutral in the
    # K-reduction; padded M/N rows/cols are sliced off afterwards).
    Mp, Np, Kp = _round_up(M, tm), _round_up(N, tn), _round_up(K, tk)
    xp = x if (Mp == M and Kp == K) else jnp.pad(x, ((0, Mp - M), (0, Kp - K)))
    mp = memory if (Np == N and Kp == K) else jnp.pad(
        memory, ((0, Np - N), (0, Kp - K)))

    grid = (Mp // tm, Np // tn, Kp // tk)

    out = pl.pallas_call(
        _exemplar_linear_kernel,
        out_shape=jax.ShapeDtypeStruct((Mp, Np), jnp.float32),
        grid_spec=pltpu.PrefetchScalarGridSpec(
            num_scalar_prefetch=0,
            grid=grid,
            in_specs=[
                pl.BlockSpec((tm, tk), lambda i, j, k: (i, k)),
                pl.BlockSpec((tn, tk), lambda i, j, k: (j, k)),
            ],
            out_specs=pl.BlockSpec((tm, tn), lambda i, j, k: (i, j)),
        ),
        compiler_params=pltpu.CompilerParams(
            dimension_semantics=("parallel", "parallel", "arbitrary"),
            vmem_limit_bytes=cfg["vmem"],
        ),
    )(xp, mp)

    if Mp != M or Np != N:
        out = out[:M, :N]
    return out.astype(x.dtype)


if __name__ == "__main__":
    # Module config (small, consistent with ExemplarLinear(num_instances, num_features))
    batch = 16
    num_features = 128
    num_instances = 256

    key = jax.random.PRNGKey(0)
    k_x, k_mem, k_tgt = jax.random.split(key, 3)

    x = jax.random.normal(k_x, (batch, num_features), dtype=jnp.float32)
    # reset_buffers(): init.normal_(memory, std=0.001)
    memory = 0.001 * jax.random.normal(
        k_mem, (num_instances, num_features), dtype=jnp.float32
    )
    targets = jax.random.randint(k_tgt, (batch,), 0, num_instances)

    out = exemplar_linear_forward(x, memory, targets, momentum=0.1)
    out = jax.block_until_ready(out)

    # Correctness check against plain JAX reference of torch.mm(x, memory.t())
    ref = x @ memory.T
    assert out.shape == (batch, num_instances)
    assert jnp.allclose(out, ref, atol=1e-5, rtol=1e-5)

    print("KERNEL_OK")
</pallas_src>

<mosaic_0001>
module attributes {stable_mosaic.version = 11 : i64} {
  func.func @_exemplar_linear_kernel(%arg0: i32, %arg1: i32, %arg2: i32, %arg3: memref<16x128xf32, #tpu.memory_space<vmem>>, %arg4: memref<256x128xf32, #tpu.memory_space<vmem>>, %arg5: memref<16x256xf32, #tpu.memory_space<vmem>>) attributes {dimension_semantics = [#tpu.dimension_semantics<parallel>, #tpu.dimension_semantics<parallel>, #tpu.dimension_semantics<arbitrary>], iteration_bounds = array<i64: 1, 1, 1>, scalar_prefetch = 0 : i64, scratch_operands = 0 : i64, tpu.core_type = #tpu.core_type<tc>, window_params = [{transform_indices = @transform_0, window_bounds = array<i64: 16, 128>}, {transform_indices = @transform_1, window_bounds = array<i64: 256, 128>}, {transform_indices = @transform_2, window_bounds = array<i64: 16, 256>}]} {
    %c0 = arith.constant 0 : index
    %c0_0 = arith.constant 0 : index
    %0 = vector.load %arg3[%c0, %c0_0] : memref<16x128xf32, #tpu.memory_space<vmem>>, vector<16x128xf32>
    %c0_1 = arith.constant 0 : index
    %c0_2 = arith.constant 0 : index
    %1 = vector.load %arg4[%c0_1, %c0_2] : memref<256x128xf32, #tpu.memory_space<vmem>>, vector<256x128xf32>
    %cst = arith.constant dense<0.000000e+00> : vector<16x256xf32>
    %2 = tpu.matmul %0, %1, %cst {dimension_numbers = #tpu.dot_dimension_numbers<[1], [1], [0], [0], [0, 0, 1, 0], [], []>} : vector<16x128xf32>, vector<256x128xf32>, vector<16x256xf32> -> vector<16x256xf32>
    %c0_i32 = arith.constant 0 : i32
    %3 = arith.cmpi eq, %arg2, %c0_i32 : i32
    %4 = arith.extui %3 : i1 to i32
    %c0_i32_3 = arith.constant 0 : i32
    %5 = arith.cmpi ne, %4, %c0_i32_3 : i32
    scf.if %5 {
      %c0_6 = arith.constant 0 : index
      %c0_7 = arith.constant 0 : index
      %9 = vector.load %arg5[%c0_6, %c0_7] : memref<16x256xf32, #tpu.memory_space<vmem>>, vector<16x256xf32>
      tpu.vector_store %arg5[%c0_6, %c0_7], %2 {strides = array<i32>} : memref<16x256xf32, #tpu.memory_space<vmem>>, vector<16x256xf32>,
    } else {
    }
    %c0_i32_4 = arith.constant 0 : i32
    %6 = arith.cmpi sgt, %arg2, %c0_i32_4 : i32
    %7 = arith.extui %6 : i1 to i32
    %c0_i32_5 = arith.constant 0 : i32
    %8 = arith.cmpi ne, %7, %c0_i32_5 : i32
    scf.if %8 {
      %c0_6 = arith.constant 0 : index
      %c0_7 = arith.constant 0 : index
      %9 = vector.load %arg5[%c0_6, %c0_7] : memref<16x256xf32, #tpu.memory_space<vmem>>, vector<16x256xf32>
      %10 = arith.addf %9, %2 : vector<16x256xf32>
      %c0_8 = arith.constant 0 : index
      %c0_9 = arith.constant 0 : index
      %11 = vector.load %arg5[%c0_8, %c0_9] : memref<16x256xf32, #tpu.memory_space<vmem>>, vector<16x256xf32>
      tpu.vector_store %arg5[%c0_8, %c0_9], %10 {strides = array<i32>} : memref<16x256xf32, #tpu.memory_space<vmem>>, vector<16x256xf32>,
    } else {
    }
    return
  }
  func.func @transform_0(%arg0: i32, %arg1: i32, %arg2: i32) -> (i32, i32) {
    %c0_i32 = arith.constant 0 : i32
    return %arg0, %arg2 : i32, i32
  }
  func.func @transform_1(%arg0: i32, %arg1: i32, %arg2: i32) -> (i32, i32) {
    %c0_i32 = arith.constant 0 : i32
    return %arg1, %arg2 : i32, i32
  }
  func.func @transform_2(%arg0: i32, %arg1: i32, %arg2: i32) -> (i32, i32) {
    %c0_i32 = arith.constant 0 : i32
    return %arg0, %arg1 : i32, i32
  }
}

</mosaic_0001>

<bundles_post_ra>
// kernel: tpu_custom_call.1
= control target key start
LH: loop header
LB: loop body
LE: loop exit
PB: predicated region body
PF: predicated region fallthrough
CT: control target
= control target key end

     0   :  { %7 = vsyncpa [#allocation3], 0  ;;  %s373_s0 = inlined_call_operand.hbm [shape: f32[16,128], index: 0, kind: input, shape index: {}]   ;;  %s374_s1 = inlined_call_operand.hbm [shape: f32[256,128], index: 1, kind: input, shape index: {}]   ;;  %s375_s2 = inlined_call_operand.hbm [shape: f32[16,256], index: 2, kind: output, shape index: {}]  }
   0x1   :  { %8 = vsyncpa [#allocation6], 0 }
   0x2   :  { %9 = vsyncpa [#allocation4], 0  ;;  %s334_s9 = smov [#allocation2]  }
   0x3   :  { %s15_s10 = sshll.u32 %s334_s9, 4  ;;  %s16_s10 = int_to_ptr.vmem [resolvable:$true] %s15_s10 }
   0x4   :  { %s276_s11 = scalar_lea.vmem %s16_s10, 256  ;;  %p281_p1 = scmp.lt.s32.totalorder %s16_s10, %s16_s10 }
   0x5   :  { %p277_p0 = scmp.ne.s32.totalorder %s16_s10, %s276_s11  ;;  %p282_p2 = scmp.lt.s32.totalorder %s276_s11, %s276_s11 }
   0x7   :  { %p283_p3 = por %p282_p2, %p281_p1 }
   0x9   :  { %p284_p4 = pnand %p283_p3, %p277_p0 }
   0xb   :  { %287 = shalt.err (!%p284_p4)
}
   0xc   :  { %s335_s12 = smov 128   ;;  %s336_s13 = smov 8  }
   0xd   :  { %21 = dma.hbm_to_vmem [thread:$0]  %s373_s0, 256, %s16_s10, [#allocation3], %s335_s12, %s335_s12, %s336_s13  }
   0xe   :  { %s337_s16 = smov [#allocation5]  }
   0xf   :  { %s27_s17 = sshll.u32 %s337_s16, 4  ;;  %s28_s17 = int_to_ptr.vmem [resolvable:$true] %s27_s17 }
  0x10   :  { %s296_s18 = scalar_lea.vmem %s28_s17, 4096  ;;  %p301_p6 = scmp.lt.s32.totalorder %s28_s17, %s28_s17 }
  0x11   :  { %p297_p5 = scmp.ne.s32.totalorder %s28_s17, %s296_s18  ;;  %p302_p7 = scmp.lt.s32.totalorder %s296_s18, %s296_s18 }
  0x13   :  { %p303_p8 = por %p302_p7, %p301_p6 }
  0x15   :  { %p304_p9 = pnand %p303_p8, %p297_p5 }
  0x17   :  { %307 = shalt.err (!%p304_p9)
}
  0x18   :  { %33 = dma.hbm_to_vmem [thread:$0]  %s374_s1, 4096, %s28_s17, [#allocation6], %s335_s12, %s335_s12, %s336_s13  }
  0x19   :  { %328 = dma.done.wait [#allocation3], 256  }
  0x1a   :  { %329 = vsyncadd [#allocation3], 4294967040 }
  0x1b   :  { %330 = dma.done.wait [#allocation6], 4096  }
  0x1c   :  { %331 = vsyncadd [#allocation6], 4294963200  ;;  %v73_v0 = vld [vmem:[#allocation5 + $0xf8] sm:$0xff]  ;;  %v72_v2 = vld [vmem:[#allocation5 + $0xf0] sm:$0xff]  ;;  %s338_s0 = smov [#allocation7]  }
  0x1d   :  { %v57_v1 = vld [vmem:[#allocation5 + $0x78] sm:$0xff]  ;;  %193 = vmatprep.subr.mxu0 %v73_v0  ;;  %229 = vmatprep.subr.mxu1 %v73_v0  ;;  %v56_v3 = vld [vmem:[#allocation5 + $0x70] sm:$0xff]  ;;  %v71_v4 = vld [vmem:[#allocation5 + $0xe8] sm:$0xff]  ;;  %s180_s1 = sshll.u32 %s338_s0, 4  ;;  %s181_s1 = int_to_ptr.vmem [resolvable:$true] %s180_s1 }
  0x1e   :  { %194 = vmatpush3.xpose.msra.mxu0 %v57_v1  ;;  %245 = vmatpush3.xpose.msra.mxu1 %v57_v1  ;;  %v55_v5 = vld [vmem:[#allocation5 + $0x68] sm:$0xff]  ;;  %v70_v6 = vld [vmem:[#allocation5 + $0xe0] sm:$0xff]  ;;  %v362_v7 = vld [vmem:[#allocation2] sm:$0xff]  ;;  %s308_s21 = scalar_lea.vmem %s181_s1, 512  ;;  %p313_p11 = scmp.lt.s32.totalorder %s181_s1, %s181_s1 }
  0x1f   :  { %195 = vmatprep.subr.mxu0 %v72_v2  ;;  %230 = vmatprep.subr.mxu1 %v72_v2  ;;  %v54_v8 = vld [vmem:[#allocation5 + $0x60] sm:$0xff]  ;;  %v364_v9 = vld [vmem:[#allocation2 + $0x8] sm:$0xff]  ;;  %v68_v12 = vld [vmem:[#allocation5 + $0xd0] sm:$0xff]  ;;  %p309_p10 = scmp.ne.s32.totalorder %s181_s1, %s308_s21  ;;  %p314_p12 = scmp.lt.s32.totalorder %s308_s21, %s308_s21 }
  0x20   :  { %v69_v10 = vld [vmem:[#allocation5 + $0xd8] sm:$0xff]  ;;  %225 = vmatprep.mubr.f32.mxu0 %v362_v7  ;;  %227 = vmatprep.mubr.f32.mxu1 %v364_v9  ;;  %v52_v13 = vld [vmem:[#allocation5 + $0x50] sm:$0xff]  ;;  %v67_v14 = vld [vmem:[#allocation5 + $0xc8] sm:$0xff] }
  0x21   :  { %v53_v11 = vld [vmem:[#allocation5 + $0x58] sm:$0xff]  ;;  %v51_v15 = vld [vmem:[#allocation5 + $0x48] sm:$0xff]  ;;  %v66_v16 = vld [vmem:[#allocation5 + $0xc0] sm:$0xff]  ;;  %p315_p13 = por %p314_p12, %p313_p11 }
  0x22   :  { %196 = vmatpush3.xpose.msra.mxu0 %v56_v3  ;;  %246 = vmatpush3.xpose.msra.mxu1 %v56_v3  ;;  %v50_v17 = vld [vmem:[#allocation5 + $0x40] sm:$0xff]  ;;  %v65_v18 = vld [vmem:[#allocation5 + $0xb8] sm:$0xff]  ;;  %v64_v20 = vld [vmem:[#allocation5 + $0xb0] sm:$0xff] }
  0x23   :  { %197 = vmatprep.subr.mxu0 %v71_v4  ;;  %231 = vmatprep.subr.mxu1 %v71_v4  ;;  %v49_v19 = vld [vmem:[#allocation5 + $0x38] sm:$0xff]  ;;  %v48_v21 = vld [vmem:[#allocation5 + $0x30] sm:$0xff]  ;;  %v63_v22 = vld [vmem:[#allocation5 + $0xa8] sm:$0xff]  ;;  %p316_p0 = pnand %p315_p13, %p309_p10 }
  0x24   :  { %v47_v23 = vld [vmem:[#allocation5 + $0x28] sm:$0xff]  ;;  %v62_v24 = vld [vmem:[#allocation5 + $0xa0] sm:$0xff]  ;;  %v61_v26 = vld [vmem:[#allocation5 + $0x98] sm:$0xff] }
  0x25   :  { %v46_v25 = vld [vmem:[#allocation5 + $0x20] sm:$0xff]  ;;  %v45_v27 = vld [vmem:[#allocation5 + $0x18] sm:$0xff]  ;;  %v60_v28 = vld [vmem:[#allocation5 + $0x90] sm:$0xff] }
  0x26   :  { %198 = vmatpush3.xpose.msra.mxu0 %v55_v5  ;;  %247 = vmatpush3.xpose.msra.mxu1 %v55_v5  ;;  %v44_v29 = vld [vmem:[#allocation5 + $0x10] sm:$0xff]  ;;  %v59_v30 = vld [vmem:[#allocation5 + $0x88] sm:$0xff]  ;;  %v58_v32 = vld [vmem:[#allocation5 + $0x80] sm:$0xff] }
  0x27   :  { %199 = vmatprep.subr.mxu0 %v70_v6  ;;  %232 = vmatprep.subr.mxu1 %v70_v6  ;;  %v43_v31 = vld [vmem:[#allocation5 + $0x8] sm:$0xff]  ;;  %v42_v33 = vld [vmem:[#allocation5] sm:$0xff] }
  0x2a   :  { %200 = vmatpush3.xpose.msra.mxu0 %v54_v8  ;;  %248 = vmatpush3.xpose.msra.mxu1 %v54_v8 }
  0x2b   :  { %201 = vmatprep.subr.mxu0 %v69_v10  ;;  %233 = vmatprep.subr.mxu1 %v69_v10 }
  0x2e   :  { %202 = vmatpush3.xpose.msra.mxu0 %v53_v11  ;;  %249 = vmatpush3.xpose.msra.mxu1 %v53_v11 }
  0x2f   :  { %203 = vmatprep.subr.mxu0 %v68_v12  ;;  %234 = vmatprep.subr.mxu1 %v68_v12 }
  0x32   :  { %204 = vmatpush3.xpose.msra.mxu0 %v52_v13  ;;  %250 = vmatpush3.xpose.msra.mxu1 %v52_v13 }
  0x33   :  { %205 = vmatprep.subr.mxu0 %v67_v14  ;;  %235 = vmatprep.subr.mxu1 %v67_v14 }
  0x36   :  { %206 = vmatpush3.xpose.msra.mxu0 %v51_v15  ;;  %251 = vmatpush3.xpose.msra.mxu1 %v51_v15 }
  0x37   :  { %207 = vmatprep.subr.mxu0 %v66_v16  ;;  %236 = vmatprep.subr.mxu1 %v66_v16 }
  0x3a   :  { %208 = vmatpush3.xpose.msra.mxu0 %v50_v17  ;;  %252 = vmatpush3.xpose.msra.mxu1 %v50_v17 }
  0x3b   :  { %209 = vmatprep.subr.mxu0 %v65_v18  ;;  %237 = vmatprep.subr.mxu1 %v65_v18 }
  0x3e   :  { %210 = vmatpush3.xpose.msra.mxu0 %v49_v19  ;;  %253 = vmatpush3.xpose.msra.mxu1 %v49_v19 }
  0x3f   :  { %211 = vmatprep.subr.mxu0 %v64_v20  ;;  %238 = vmatprep.subr.mxu1 %v64_v20 }
  0x42   :  { %212 = vmatpush3.xpose.msra.mxu0 %v48_v21  ;;  %254 = vmatpush3.xpose.msra.mxu1 %v48_v21 }
  0x43   :  { %213 = vmatprep.subr.mxu0 %v63_v22  ;;  %239 = vmatprep.subr.mxu1 %v63_v22 }
  0x46   :  { %214 = vmatpush3.xpose.msra.mxu0 %v47_v23  ;;  %255 = vmatpush3.xpose.msra.mxu1 %v47_v23 }
  0x47   :  { %215 = vmatprep.subr.mxu0 %v62_v24  ;;  %240 = vmatprep.subr.mxu1 %v62_v24 }
  0x4a   :  { %216 = vmatpush3.xpose.msra.mxu0 %v46_v25  ;;  %256 = vmatpush3.xpose.msra.mxu1 %v46_v25 }
  0x4b   :  { %217 = vmatprep.subr.mxu0 %v61_v26  ;;  %241 = vmatprep.subr.mxu1 %v61_v26 }
  0x4e   :  { %218 = vmatpush3.xpose.msra.mxu0 %v45_v27  ;;  %257 = vmatpush3.xpose.msra.mxu1 %v45_v27 }
  0x4f   :  { %219 = vmatprep.subr.mxu0 %v60_v28  ;;  %242 = vmatprep.subr.mxu1 %v60_v28 }
  0x52   :  { %220 = vmatpush3.xpose.msra.mxu0 %v44_v29  ;;  %258 = vmatpush3.xpose.msra.mxu1 %v44_v29 }
  0x53   :  { %221 = vmatprep.subr.mxu0 %v59_v30  ;;  %243 = vmatprep.subr.mxu1 %v59_v30 }
  0x56   :  { %222 = vmatpush3.xpose.msra.mxu0 %v43_v31  ;;  %259 = vmatpush3.xpose.msra.mxu1 %v43_v31 }
  0x57   :  { %223 = vmatprep.subr.mxu0 %v58_v32  ;;  %244 = vmatprep.subr.mxu1 %v58_v32 }
  0x5a   :  { %224 = vmatpush3.xpose.msra.mxu0 %v42_v33  ;;  %260 = vmatpush3.xpose.msra.mxu1 %v42_v33 }
  0x5d   :  { %226 = vmatmul.mubr.f32.vlgmr.msra.gmra.mxu0 %v362_v7  ;;  %228 = vmatmul.mubr.f32.vlgmr.msra.gmra.mxu1 %v364_v9 }
 0x11d   :  { %v140_v34 = vpop.f32.mrf.mxu0  ;;  %v146_v35 = vpop.f32.mrf.mxu1 }
 0x11e   :  { %155 = vst [vmem:[#allocation7] sm:$0xff] %v140_v34  ;;  %157 = vst [vmem:[#allocation7 + $0x10] sm:$0xff] %v146_v35 }
 0x11f   :  { %v142_v36 = vpop.f32.mrf.mxu0  ;;  %v148_v37 = vpop.f32.mrf.mxu1 }
 0x120   :  { %156 = vst [vmem:[#allocation7 + $0x8] sm:$0xff] %v142_v36  ;;  %158 = vst [vmem:[#allocation7 + $0x18] sm:$0xff] %v148_v37 }
 0x121   :  { %319 = shalt.err (!%p316_p0)
}
 0x122   :  { %s339_s22 = smov 256   ;;  %s340_s23 = smov 16  }
 0x123   :  { %186 = dma.vmem_to_hbm [thread:$0]  %s181_s1, 512, %s375_s2, [#allocation4], %s339_s22, %s339_s22, %s340_s23  }
 0x124   :  { %332 = dma.done.wait [#allocation4], 512  }
 0x125   :  { %333 = vsyncadd [#allocation4], 4294966784 }
 0x126   :  { %190 = vsyncpa [#allocation3], 1 }
 0x127   :  { %191 = vsyncpa [#allocation6], 1 }
 0x128   :  { %192 = vsyncpa [#allocation4], 1 }

</bundles_post_ra>
